<compile_context>
chip_gen: v7x
topology: tpu7x:2x2x1
jax: 0.10.0
libtpu: 0.0.40
codegen_flags: <defaults>
</compile_context>

<pallas_src>
import jax
import jax.numpy as jnp
from jax.experimental import pallas as pl
from jax.experimental.pallas import tpu as pltpu

_LANE = 128
_SUBLANE = 8


def _round_up(n: int, m: int) -> int:
    return ((n + m - 1) // m) * m


def _vmem_budget_bytes() -> int:
    """Generation-aware VMEM budget (v5e/v6e: ~96 MiB, v7x: ~48 MiB)."""
    cap = 64 * 1024 * 1024  # conservative fallback = v7x per-core physical VMEM
    try:
        cap = int(pltpu.get_tpu_info().vmem_capacity_bytes)
    except Exception:
        pass
    return max(32 * 1024 * 1024, min((cap * 3) // 4, cap - 8 * 1024 * 1024))


def _cond_bias_scale_kernel(x_ref, cond_ref, ws_ref, wb_ref, bs_ref, bb_ref, o_ref):
    # Two tiny MXU projections share the loaded cond tile; f32 accumulation.
    cond = cond_ref[...].astype(jnp.float32)
    a = jnp.dot(cond, ws_ref[...], preferred_element_type=jnp.float32) + bs_ref[...]
    b = jnp.dot(cond, wb_ref[...], preferred_element_type=jnp.float32) + bb_ref[...]
    o_ref[...] = (x_ref[...].astype(jnp.float32) * a + b).astype(o_ref.dtype)


def conditional_bias_scale(x, cond, ws, bs, wb, bb, *, target_tile_bytes=4 * 1024 * 1024):
    """y = x * (cond @ ws.T + bs) + (cond @ wb.T + bb)   (channels-last).

    Args:
        x    : [..., C]
        cond : [..., Ccond]
        ws   : [C, Ccond]  scale_transform.weight (PyTorch nn.Linear layout)
        bs   : [C]         scale_transform.bias
        wb   : [C, Ccond]  bias_transform.weight
        bb   : [C]         bias_transform.bias
    Returns:
        y    : [..., C]  (same dtype as x)
    """
    orig_shape = x.shape
    C = x.shape[-1]
    Ccond = cond.shape[-1]
    x2 = x.reshape(-1, C)          # free row-major reshape, no copy pass
    cond2 = cond.reshape(-1, Ccond)
    N = x2.shape[0]

    f32 = jnp.float32
    ws_t = ws.T.astype(f32)        # [Ccond, C] — one-time, tiny
    wb_t = wb.T.astype(f32)
    bs2 = bs.reshape(1, C).astype(f32)
    bb2 = bb.reshape(1, C).astype(f32)

    x_it = jnp.dtype(x2.dtype).itemsize
    c_it = jnp.dtype(cond2.dtype).itemsize

    # ---- row-tile selection -------------------------------------------------
    # HBM side: ~target_tile_bytes of x per grid step amortizes per-step overhead.
    hbm_rows = max(_SUBLANE, target_tile_bytes // max(1, C * x_it))

    # VMEM side: last dims are lane-padded to 128 in VMEM; streams double-buffered;
    # reserve room for the two f32 matmul results / casts produced in the body.
    C_l = _round_up(C, _LANE)
    Cc_l = _round_up(Ccond, _LANE)
    per_row_stream = 2 * (C_l * x_it + Cc_l * c_it + C_l * x_it)   # x, cond, out (x2 buffers)
    per_row_temps = 4 * C_l * 4                                    # a, b, f32 casts

    resident_single = (2 * _round_up(Ccond, _SUBLANE) * C_l + 2 * _SUBLANE * C_l) * 4
    # Single-buffer the grid-constant weights/biases only when it actually saves VMEM.
    use_single_buffer_residents = hasattr(pl, "Buffered") and resident_single > (1 << 20)
    resident = resident_single * (1 if use_single_buffer_residents else 2)

    budget = _vmem_budget_bytes()
    vmem_rows = max(_SUBLANE, (budget - resident) // (per_row_stream + per_row_temps))

    row_tile = int(min(hbm_rows, vmem_rows))
    row_tile = max(_SUBLANE, (row_tile // _SUBLANE) * _SUBLANE)
    if N <= row_tile:
        row_tile = N               # single full-extent block (legal for any N)
    grid = (pl.cdiv(N, row_tile),)  # ragged last tile handled by Pallas (no row padding)
    # TODO(synk): for very large C*Ccond (fused weights exceeding the VMEM budget) add a
    # second grid axis tiling the channel dim; unnecessary at this module's sizes.

    def _resident_spec(shape):
        imap = lambda i: (0,) * len(shape)
        if use_single_buffer_residents:
            try:
                return pl.BlockSpec(shape, imap, pipeline_mode=pl.Buffered(1))
            except Exception:
                pass
        return pl.BlockSpec(shape, imap)

    in_specs = [
        pl.BlockSpec((row_tile, C), lambda i: (i, 0)),      # x stream (unpadded width)
        pl.BlockSpec((row_tile, Ccond), lambda i: (i, 0)),  # cond stream (unpadded width)
        _resident_spec((Ccond, C)),                         # Ws^T (grid-constant)
        _resident_spec((Ccond, C)),                         # Wb^T (grid-constant)
        _resident_spec((1, C)),                             # bs
        _resident_spec((1, C)),                             # bb
    ]
    out_spec = pl.BlockSpec((row_tile, C), lambda i: (i, 0))

    out = pl.pallas_call(
        _cond_bias_scale_kernel,
        out_shape=jax.ShapeDtypeStruct((N, C), x.dtype),
        grid_spec=pltpu.PrefetchScalarGridSpec(
            num_scalar_prefetch=0,
            grid=grid,
            in_specs=in_specs,
            out_specs=out_spec,
        ),
        compiler_params=pltpu.CompilerParams(
            dimension_semantics=("parallel",),   # rows independent -> shards across v7x's 2 TCs
            vmem_limit_bytes=int(budget),
        ),
    )(x2, cond2, ws_t, wb_t, bs2, bb2)

    return out.reshape(orig_shape)


def _reference(x, cond, ws, bs, wb, bb):
    a = cond @ ws.T + bs
    b = cond @ wb.T + bb
    return x * a + b


if __name__ == "__main__":
    key = jax.random.PRNGKey(0)

    # --- Test 1: module-sized shapes, random weights (real matmul path) ---
    batch, seq = 2, 8
    channels, cond_channels = 32, 16
    kx, kc, kw1, kb1, kw2, kb2 = jax.random.split(key, 6)
    x = jax.random.normal(kx, (batch, seq, channels), dtype=jnp.float32)
    cond = jax.random.normal(kc, (batch, seq, cond_channels), dtype=jnp.float32)
    ws = jax.random.normal(kw1, (channels, cond_channels), dtype=jnp.float32) * 0.1
    bs = jax.random.normal(kb1, (channels,), dtype=jnp.float32)
    wb = jax.random.normal(kw2, (channels, cond_channels), dtype=jnp.float32) * 0.1
    bb = jax.random.normal(kb2, (channels,), dtype=jnp.float32)

    y = jax.block_until_ready(conditional_bias_scale(x, cond, ws, bs, wb, bb))
    y_ref = _reference(x, cond, ws, bs, wb, bb)
    assert y.shape == x.shape
    assert jnp.allclose(y, y_ref, atol=1e-5, rtol=1e-5)

    # --- Test 2: module's deterministic init (scale W=0 b=1, bias W=0 b=0), ragged N=21 ---
    batch2, seq2 = 3, 7
    kx2, kc2 = jax.random.split(jax.random.PRNGKey(1))
    x2 = jax.random.normal(kx2, (batch2, seq2, channels), dtype=jnp.float32)
    cond2 = jax.random.normal(kc2, (batch2, seq2, cond_channels), dtype=jnp.float32)
    ws0 = jnp.zeros((channels, cond_channels), dtype=jnp.float32)
    bs1 = jnp.ones((channels,), dtype=jnp.float32)
    wb0 = jnp.zeros((channels, cond_channels), dtype=jnp.float32)
    bb0 = jnp.zeros((channels,), dtype=jnp.float32)

    y2 = jax.block_until_ready(conditional_bias_scale(x2, cond2, ws0, bs1, wb0, bb0))
    y2_ref = _reference(x2, cond2, ws0, bs1, wb0, bb0)
    assert y2.shape == x2.shape
    assert jnp.allclose(y2, y2_ref, atol=1e-5, rtol=1e-5)
    assert jnp.allclose(y2, x2, atol=1e-5, rtol=1e-5)   # identity init => y == x

    # --- Test 3: multi-tile streaming path with a ragged last tile (forced small tile) ---
    batch3, seq3 = 2, 900   # N = 1800 rows
    kx3, kc3 = jax.random.split(jax.random.PRNGKey(2))
    x3 = jax.random.normal(kx3, (batch3, seq3, channels), dtype=jnp.float32)
    cond3 = jax.random.normal(kc3, (batch3, seq3, cond_channels), dtype=jnp.float32)
    y3 = jax.block_until_ready(
        conditional_bias_scale(x3, cond3, ws, bs, wb, bb, target_tile_bytes=64 * 1024))
    y3_ref = _reference(x3, cond3, ws, bs, wb, bb)
    assert y3.shape == x3.shape
    assert jnp.allclose(y3, y3_ref, atol=1e-5, rtol=1e-5)

    print("KERNEL_OK")
</pallas_src>

<mosaic_0001>
module attributes {stable_mosaic.version = 11 : i64} {
  func.func @_cond_bias_scale_kernel(%arg0: i32, %arg1: memref<16x32xf32, #tpu.memory_space<vmem>>, %arg2: memref<16x16xf32, #tpu.memory_space<vmem>>, %arg3: memref<16x32xf32, #tpu.memory_space<vmem>>, %arg4: memref<16x32xf32, #tpu.memory_space<vmem>>, %arg5: memref<1x32xf32, #tpu.memory_space<vmem>>, %arg6: memref<1x32xf32, #tpu.memory_space<vmem>>, %arg7: memref<16x32xf32, #tpu.memory_space<vmem>>) attributes {dimension_semantics = [#tpu.dimension_semantics<parallel>], iteration_bounds = array<i64: 1>, scalar_prefetch = 0 : i64, scratch_operands = 0 : i64, tpu.core_type = #tpu.core_type<tc>, window_params = [{transform_indices = @transform_0, window_bounds = array<i64: 16, 32>}, {transform_indices = @transform_1, window_bounds = array<i64: 16, 16>}, {pipeline_mode = #tpu.pipeline_mode<synchronous>, transform_indices = @transform_2, window_bounds = array<i64: 16, 32>}, {pipeline_mode = #tpu.pipeline_mode<synchronous>, transform_indices = @transform_3, window_bounds = array<i64: 16, 32>}, {pipeline_mode = #tpu.pipeline_mode<synchronous>, transform_indices = @transform_4, window_bounds = array<i64: 1, 32>}, {pipeline_mode = #tpu.pipeline_mode<synchronous>, transform_indices = @transform_5, window_bounds = array<i64: 1, 32>}, {transform_indices = @transform_6, window_bounds = array<i64: 16, 32>}]} {
    %c0 = arith.constant 0 : index
    %c0_0 = arith.constant 0 : index
    %0 = vector.load %arg2[%c0, %c0_0] : memref<16x16xf32, #tpu.memory_space<vmem>>, vector<16x16xf32>
    %c0_1 = arith.constant 0 : index
    %c0_2 = arith.constant 0 : index
    %1 = vector.load %arg3[%c0_1, %c0_2] : memref<16x32xf32, #tpu.memory_space<vmem>>, vector<16x32xf32>
    %cst = arith.constant dense<0.000000e+00> : vector<16x32xf32>
    %2 = tpu.matmul %0, %1, %cst {dimension_numbers = #tpu.dot_dimension_numbers<[1], [0], [0], [1], [0, 0, 1, 1], [], []>} : vector<16x16xf32>, vector<16x32xf32>, vector<16x32xf32> -> vector<16x32xf32>
    %c0_3 = arith.constant 0 : index
    %c0_4 = arith.constant 0 : index
    %3 = vector.load %arg5[%c0_3, %c0_4] : memref<1x32xf32, #tpu.memory_space<vmem>>, vector<1x32xf32>
    %4 = vector.broadcast %3 : vector<1x32xf32> to vector<16x32xf32>
    %5 = arith.addf %2, %4 : vector<16x32xf32>
    %c0_5 = arith.constant 0 : index
    %c0_6 = arith.constant 0 : index
    %6 = vector.load %arg4[%c0_5, %c0_6] : memref<16x32xf32, #tpu.memory_space<vmem>>, vector<16x32xf32>
    %cst_7 = arith.constant dense<0.000000e+00> : vector<16x32xf32>
    %7 = tpu.matmul %0, %6, %cst_7 {dimension_numbers = #tpu.dot_dimension_numbers<[1], [0], [0], [1], [0, 0, 1, 1], [], []>} : vector<16x16xf32>, vector<16x32xf32>, vector<16x32xf32> -> vector<16x32xf32>
    %c0_8 = arith.constant 0 : index
    %c0_9 = arith.constant 0 : index
    %8 = vector.load %arg6[%c0_8, %c0_9] : memref<1x32xf32, #tpu.memory_space<vmem>>, vector<1x32xf32>
    %9 = vector.broadcast %8 : vector<1x32xf32> to vector<16x32xf32>
    %10 = arith.addf %7, %9 : vector<16x32xf32>
    %c0_10 = arith.constant 0 : index
    %c0_11 = arith.constant 0 : index
    %11 = vector.load %arg1[%c0_10, %c0_11] : memref<16x32xf32, #tpu.memory_space<vmem>>, vector<16x32xf32>
    %12 = arith.mulf %11, %5 : vector<16x32xf32>
    %13 = arith.addf %12, %10 : vector<16x32xf32>
    %c0_12 = arith.constant 0 : index
    %c0_13 = arith.constant 0 : index
    %14 = vector.load %arg7[%c0_12, %c0_13] : memref<16x32xf32, #tpu.memory_space<vmem>>, vector<16x32xf32>
    tpu.vector_store %arg7[%c0_12, %c0_13], %13 {strides = array<i32>} : memref<16x32xf32, #tpu.memory_space<vmem>>, vector<16x32xf32>,
    return
  }
  func.func @transform_0(%arg0: i32) -> (i32, i32) {
    %c0_i32 = arith.constant 0 : i32
    %c0_i32_0 = arith.constant 0 : i32
    return %arg0, %c0_i32 : i32, i32
  }
  func.func @transform_1(%arg0: i32) -> (i32, i32) {
    %c0_i32 = arith.constant 0 : i32
    %c0_i32_0 = arith.constant 0 : i32
    return %arg0, %c0_i32 : i32, i32
  }
  func.func @transform_2(%arg0: i32) -> (i32, i32) {
    %c0_i32 = arith.constant 0 : i32
    %c0_i32_0 = arith.constant 0 : i32
    %c0_i32_1 = arith.constant 0 : i32
    return %c0_i32, %c0_i32_0 : i32, i32
  }
  func.func @transform_3(%arg0: i32) -> (i32, i32) {
    %c0_i32 = arith.constant 0 : i32
    %c0_i32_0 = arith.constant 0 : i32
    %c0_i32_1 = arith.constant 0 : i32
    return %c0_i32, %c0_i32_0 : i32, i32
  }
  func.func @transform_4(%arg0: i32) -> (i32, i32) {
    %c0_i32 = arith.constant 0 : i32
    %c0_i32_0 = arith.constant 0 : i32
    %c0_i32_1 = arith.constant 0 : i32
    return %c0_i32, %c0_i32_0 : i32, i32
  }
  func.func @transform_5(%arg0: i32) -> (i32, i32) {
    %c0_i32 = arith.constant 0 : i32
    %c0_i32_0 = arith.constant 0 : i32
    %c0_i32_1 = arith.constant 0 : i32
    return %c0_i32, %c0_i32_0 : i32, i32
  }
  func.func @transform_6(%arg0: i32) -> (i32, i32) {
    %c0_i32 = arith.constant 0 : i32
    %c0_i32_0 = arith.constant 0 : i32
    return %arg0, %c0_i32 : i32, i32
  }
}

</mosaic_0001>

<bundles_post_ra>
// kernel: tpu_custom_call.1
= control target key start
LH: loop header
LB: loop body
LE: loop exit
PB: predicated region body
PF: predicated region fallthrough
CT: control target
= control target key end

     0   :  { %11 = vsyncpa [#allocation3], 0  ;;  %s586_s0 = inlined_call_operand.hbm [shape: f32[16,32], index: 0, kind: input, shape index: {}]   ;;  %s587_s1 = inlined_call_operand.hbm [shape: f32[16,16], index: 1, kind: input, shape index: {}]   ;;  %s588_s2 = inlined_call_operand.hbm [shape: f32[16,32], index: 2, kind: input, shape index: {}]   ;;  %s589_s3 = inlined_call_operand.hbm [shape: f32[16,32], index: 3, kind: input, shape index: {}]   ;;  %s590_s4 = inlined_call_operand.vmem [shape: f32[1,32], index: 4, kind: input, shape index: {}]   ;;  %s591_s5 = inlined_call_operand.vmem [shape: f32[1,32], index: 5, kind: input, shape index: {}]   ;;  %s592_s6 = inlined_call_operand.hbm [shape: f32[16,32], index: 6, kind: output, shape index: {}]  }
   0x1   :  { %12 = vsyncpa [#allocation6], 0 }
   0x2   :  { %13 = vsyncpa [#allocation9], 0 }
   0x3   :  { %14 = vsyncpa [#allocation4], 0  ;;  %s445_s21 = smov [#allocation5]   ;;  %s446_s23 = smov [#allocation2]  }
   0x4   :  { %s32_s22 = sshll.u32 %s445_s21, 4  ;;  %s20_s24 = sshll.u32 %s446_s23, 4  ;;  %s33_s22 = int_to_ptr.vmem [resolvable:$true] %s32_s22  ;;  %s487_s24 = int_to_ptr.vmem [resolvable:$true] %s20_s24 }
   0x5   :  { %s327_s27 = scalar_lea.hbm %s587_s1, 256 }
   0x6   :  { %p328_p0 = scmp.ne.s32.totalorder %s587_s1, %s327_s27  ;;  %p331_p1 = scmp.lt.u32.totalorder %s327_s27, %s587_s1 }
   0x8   :  { %p333_p2 = pnand %p331_p1, %p328_p0 }
   0xa   :  { %336 = shalt.err (!%p333_p2)
}
   0xb   :  { %s337_s8 = scalar_lea.vmem %s33_s22, 256  ;;  %p342_p4 = scmp.lt.s32.totalorder %s33_s22, %s33_s22 }
   0xc   :  { %p338_p3 = scmp.ne.s32.totalorder %s33_s22, %s337_s8  ;;  %p343_p5 = scmp.lt.s32.totalorder %s337_s8, %s337_s8 }
   0xe   :  { %p344_p6 = por %p343_p5, %p342_p4 }
  0x10   :  { %p345_p7 = pnand %p344_p6, %p338_p3 }
  0x12   :  { %348 = shalt.err (!%p345_p7)
}
  0x13   :  { %s447_s9 = smov 128   ;;  %s448_s10 = smov 8  }
  0x14   :  { %38 = dma.hbm_to_vmem [thread:$0]  %s587_s1, 256, %s33_s22, [#allocation6], %s447_s9, %s447_s9, %s448_s10  }
  0x15   :  { %s349_s15 = scalar_lea.hbm %s586_s0, 256 }
  0x16   :  { %p350_p8 = scmp.ne.s32.totalorder %s586_s0, %s349_s15  ;;  %p353_p9 = scmp.lt.u32.totalorder %s349_s15, %s586_s0 }
  0x18   :  { %p355_p10 = pnand %p353_p9, %p350_p8 }
  0x1a   :  { %358 = shalt.err (!%p355_p10)
}
  0x1b   :  { %s359_s20 = scalar_lea.vmem %s487_s24, 256  ;;  %p364_p12 = scmp.lt.s32.totalorder %s487_s24, %s487_s24 }
  0x1c   :  { %p360_p11 = scmp.ne.s32.totalorder %s487_s24, %s359_s20  ;;  %p365_p13 = scmp.lt.s32.totalorder %s359_s20, %s359_s20 }
  0x1e   :  { %p366_p0 = por %p365_p13, %p364_p12 }
  0x20   :  { %p367_p1 = pnand %p366_p0, %p360_p11 }
  0x22   :  { %370 = shalt.err (!%p367_p1)
}
  0x23   :  { %26 = dma.hbm_to_vmem [thread:$0]  %s586_s0, 256, %s487_s24, [#allocation3], %s447_s9, %s447_s9, %s448_s10  }
  0x24   :  { %s449_s22 = smov [#allocation7]   ;;  %s450_s25 = smov [#allocation8]  }
  0x25   :  { %s44_s23 = sshll.u32 %s449_s22, 4  ;;  %s56_s26 = sshll.u32 %s450_s25, 4  ;;  %s45_s23 = int_to_ptr.vmem [resolvable:$true] %s44_s23  ;;  %s524_s26 = int_to_ptr.vmem [resolvable:$true] %s56_s26 }
  0x26   :  { %s371_s29 = scalar_lea.hbm %s588_s2, 256 }
  0x27   :  { %p372_p2 = scmp.ne.s32.totalorder %s588_s2, %s371_s29  ;;  %p375_p3 = scmp.lt.u32.totalorder %s371_s29, %s588_s2 }
  0x29   :  { %p377_p4 = pnand %p375_p3, %p372_p2 }
  0x2b   :  { %380 = shalt.err (!%p377_p4)
}
  0x2c   :  { %s381_s0 = scalar_lea.vmem %s45_s23, 256  ;;  %p386_p6 = scmp.lt.s32.totalorder %s45_s23, %s45_s23 }
  0x2d   :  { %p382_p5 = scmp.ne.s32.totalorder %s45_s23, %s381_s0  ;;  %p387_p7 = scmp.lt.s32.totalorder %s381_s0, %s381_s0 }
  0x2f   :  { %p388_p8 = por %p387_p7, %p386_p6 }
  0x31   :  { %p389_p9 = pnand %p388_p8, %p382_p5 }
  0x33   :  { %392 = shalt.err (!%p389_p9)
}
  0x34   :  { %50 = dma.hbm_to_vmem [thread:$0]  %s588_s2, 256, %s45_s23, [#allocation6], %s447_s9, %s447_s9, %s448_s10  }
  0x35   :  { %s393_s15 = scalar_lea.hbm %s589_s3, 256 }
  0x36   :  { %p394_p10 = scmp.ne.s32.totalorder %s589_s3, %s393_s15  ;;  %p397_p11 = scmp.lt.u32.totalorder %s393_s15, %s589_s3 }
  0x38   :  { %p399_p12 = pnand %p397_p11, %p394_p10 }
  0x3a   :  { %402 = shalt.err (!%p399_p12)
}
  0x3b   :  { %s403_s20 = scalar_lea.vmem %s524_s26, 256  ;;  %p408_p0 = scmp.lt.s32.totalorder %s524_s26, %s524_s26 }
  0x3c   :  { %p404_p13 = scmp.ne.s32.totalorder %s524_s26, %s403_s20  ;;  %p409_p1 = scmp.lt.s32.totalorder %s403_s20, %s403_s20 }
  0x3e   :  { %p410_p2 = por %p409_p1, %p408_p0 }
  0x40   :  { %p411_p3 = pnand %p410_p2, %p404_p13 }
  0x42   :  { %414 = shalt.err (!%p411_p3)
}
  0x43   :  { %62 = dma.hbm_to_vmem [thread:$0]  %s589_s3, 256, %s524_s26, [#allocation9], %s447_s9, %s447_s9, %s448_s10  }
  0x44   :  { %437 = dma.done.wait [#allocation3], 256  }
  0x45   :  { %438 = vsyncadd [#allocation3], 4294967040 }
  0x46   :  { %439 = dma.done.wait [#allocation6], 512  }
  0x47   :  { %440 = vsyncadd [#allocation6], 4294966784 }
  0x48   :  { %441 = dma.done.wait [#allocation9], 256  }
  0x49   :  { %442 = vsyncadd [#allocation9], 4294967040  ;;  %vm90_vm0 = vcmask 130048   ;;  %v81_v0 = vld [vmem:[#allocation7] sm:$0xff]  ;;  %v82_v1 = vld [vmem:[#allocation7 + $0x8] sm:$0xff]  ;;  %s451_s25 = smov [#allocation10]  }
  0x4a   :  { %v172_v2 = vld [vmem:[#allocation8] sm:$0xff]  ;;  %v312_v3 = vpack.c.bf16 %v82_v1, %v81_v0  ;;  %v173_v4 = vld [vmem:[#allocation8 + $0x8] sm:$0xff]  ;;  %v284_v8 = vld [vmem:[%s590_s4] ss:$0 sm:$0xff]  ;;  %s270_s26 = sshll.u32 %s451_s25, 4  ;;  %vm262_vm1 = vcmask 261120   ;;  %s271_s26 = int_to_ptr.vmem [resolvable:$true] %s270_s26 }
  0x4b   :  { %v79_v5 = vld [vmem:[#allocation5] sm:$0xff]  ;;  %v316_v6 = vpack.c.bf16 %v173_v4, %v172_v2  ;;  %v80_v7 = vld [vmem:[#allocation5 + $0x8] sm:$0xff]  ;;  %v287_v9 = vld [vmem:[%s591_s5] ss:$0 sm:$0xff]  ;;  %s415_s4 = scalar_lea.vmem %s271_s26, 256  ;;  %p420_p5 = scmp.lt.s32.totalorder %s271_s26, %s271_s26 }
  0x4c   :  { %302 = vmatprep.mubr.msk.f32.mxu0 %vm90_vm0, %v79_v5  ;;  %309 = vmatprep.mubr.msk.f32.mxu1 %vm90_vm0, %v79_v5  ;;  %v257_v11 = vld [vmem:[#allocation2 + $0x8] sm:$0xff]  ;;  %v256_v14 = vld [vmem:[#allocation2] sm:$0xff]  ;;  %p416_p4 = scmp.ne.s32.totalorder %s271_s26, %s415_s4  ;;  %p421_p6 = scmp.lt.s32.totalorder %s415_s4, %s415_s4 }
  0x4d   :  { %313 = vmatprep.subr.bf16.mxu0 %v312_v3  ;;  %317 = vmatprep.subr.bf16.mxu1 %v316_v6 }
  0x4e   :  { %315 = vmatpush3.bf16.msra.mxu0 %v312_v3  ;;  %319 = vmatpush3.bf16.msra.mxu1 %v316_v6  ;;  %p422_p7 = por %p421_p6, %p420_p5 }
  0x50   :  { %p423_p8 = pnand %p422_p7, %p416_p4 }
  0x51   :  { %303 = vmatmul.mubr.msk.f32.vlgmr.msra.gmra.mrb[0].mxu0 %vm90_vm0, %v80_v7  ;;  %310 = vmatmul.mubr.msk.f32.vlgmr.msra.gmra.mrb[0].mxu1 %vm90_vm0, %v80_v7 }
 0x124   :  { %v304_v10 = vpop.f32.mrb[0].mxu0  ;;  %v311_v15 = vpop.f32.mrb[0].mxu1 }
 0x125   :  { %v169_v12 = vadd.f32 %v304_v10, %v284_v8  ;;  %v163_v13 = vpop.f32.mrb[1].mxu0  ;;  %v253_v17 = vadd.f32 %v311_v15, %v287_v9  ;;  %v247_v18 = vpop.f32.mrb[1].mxu1 }
 0x126   :  { %v164_v16 = vadd.f32 %v284_v8, %v163_v13  ;;  %v248_v20 = vadd.f32 %v287_v9, %v247_v18 }
 0x127   :  { %v259_v19 = vmul.f32 %v257_v11, %v169_v12 }
 0x128   :  { %v258_v21 = vmul.f32 %v256_v14, %v164_v16 }
 0x129   :  { %v261_v22 = vadd.f32 %v259_v19, %v253_v17 }
 0x12a   :  { %v260_v23 = vadd.f32 %v258_v21, %v248_v20 }
 0x12b   :  { %264 = vst.msk [vmem:[#allocation10 + $0x8] sm:$0xff] %vm262_vm1, %v261_v22 }
 0x12c   :  { %263 = vst.msk [vmem:[#allocation10] sm:$0xff] %vm262_vm1, %v260_v23 }
 0x12d   :  { %426 = shalt.err (!%p423_p8)
}
 0x12e   :  { %s427_s28 = scalar_lea.hbm %s592_s6, 256 }
 0x12f   :  { %p428_p9 = scmp.ne.s32.totalorder %s592_s6, %s427_s28  ;;  %p431_p10 = scmp.lt.u32.totalorder %s427_s28, %s592_s6 }
 0x131   :  { %p433_p11 = pnand %p431_p10, %p428_p9 }
 0x133   :  { %436 = shalt.err (!%p433_p11)
}
 0x134   :  { %276 = dma.vmem_to_hbm [thread:$0]  %s271_s26, 256, %s592_s6, [#allocation4], %s447_s9, %s447_s9, %s448_s10  }
 0x135   :  { %443 = dma.done.wait [#allocation4], 256  }
 0x136   :  { %444 = vsyncadd [#allocation4], 4294967040 }
 0x137   :  { %280 = vsyncpa [#allocation3], 1 }
 0x138   :  { %281 = vsyncpa [#allocation6], 1 }
 0x139   :  { %282 = vsyncpa [#allocation9], 1 }
 0x13a   :  { %283 = vsyncpa [#allocation4], 1 }

</bundles_post_ra>
